<compile_context>
chip_gen: v7x
topology: tpu7x:2x2x1
jax: 0.10.0
libtpu: 0.0.40
codegen_flags: <defaults>
</compile_context>

<pallas_src>
import jax
import jax.numpy as jnp
from jax.experimental import pallas as pl
from jax.experimental.pallas import tpu as pltpu

NUM_HIDDEN_NODES = 10  # num_hidden_nodes in the reference module


def _classifier_kernel(x_ref, w1_ref, b1_ref, w2_ref, b2_ref, out_ref):
    """One (TB)-row batch tile of the forward pass.

    x_ref  : (TB, F)   batch tile of the input
    w1_ref : (H, F)    nn.Linear weight (un-transposed), VMEM-resident
    b1_ref : (H, 1)
    w2_ref : (1, H)
    b2_ref : (1, 1)
    out_ref: (1, TB)   lane-dense output slab
    """
    x = x_ref[...]                                               # (TB, F)

    # hidden1 + ReLU: W1 (H,F) contracted against x (TB,F) on F -> (H, TB).
    # Same transposed-RHS (q @ k^T) MXU pattern used by flash attention.
    h = jnp.dot(w1_ref[...], x.T, preferred_element_type=jnp.float32)
    h = jnp.maximum(h + b1_ref[...], 0.0)                        # (H, TB)

    # output + Sigmoid: plain (1,H) @ (H,TB) -> (1, TB), lane-dense.
    o = jnp.dot(w2_ref[...], h, preferred_element_type=jnp.float32)
    o = o + b2_ref[...]                                          # (1, TB)
    o = 1.0 / (1.0 + jnp.exp(-o))                                # exp -> EUP

    out_ref[...] = o.astype(out_ref.dtype)


def _round_up(a: int, m: int) -> int:
    return (a + m - 1) // m * m


def classifier_forward(x, w1, b1, w2, b2, *, block_b: int = 2048):
    """x: (B, F) float32.  w1: (H, F), b1: (H,), w2: (1, H), b2: (1,) —
    same shapes/conventions as the PyTorch nn.Linear parameters."""
    B, F = x.shape
    H = w1.shape[0]
    assert block_b % 128 == 0, "batch tile must be lane-aligned (multiple of 128)"

    # Reshape tiny params for TPU-friendly 2-D broadcasting (glue only).
    b1_2d = b1.reshape(H, 1)          # broadcasts across the TB lane axis
    w2_2d = w2.reshape(1, H)
    b2_2d = b2.reshape(1, 1)

    # Batch tile: multiple of 128 (lane-dense output), capped at block_b.
    tb = min(block_b, _round_up(B, 128))
    b_pad = _round_up(B, tb)
    if b_pad != B:
        x = jnp.pad(x, ((0, b_pad - B), (0, 0)))
    grid = (b_pad // tb,)

    const0 = lambda i: (0, 0)  # weights/biases: same block every step (resident)

    out = pl.pallas_call(
        _classifier_kernel,
        out_shape=jax.ShapeDtypeStruct((1, b_pad), jnp.float32),
        grid=grid,
        in_specs=[
            pl.BlockSpec((tb, F), lambda i: (i, 0)),   # streamed x tiles
            pl.BlockSpec((H, F), const0),              # w1, resident
            pl.BlockSpec((H, 1), const0),              # b1, resident
            pl.BlockSpec((1, H), const0),              # w2, resident
            pl.BlockSpec((1, 1), const0),              # b2, resident
        ],
        out_specs=pl.BlockSpec((1, tb), lambda i: (0, i)),   # lane-dense store
        compiler_params=pltpu.CompilerParams(
            dimension_semantics=("parallel",),          # v7x: shard B over 2 TCs
            vmem_limit_bytes=32 * 1024 * 1024,          # explicit, v7x-safe
        ),
    )(x, w1, b1_2d, w2_2d, b2_2d)

    return out[0, :B].reshape(B, 1)


def reference_forward(x, w1, b1, w2, b2):
    h = jnp.maximum(x @ w1.T + b1, 0.0)
    o = h @ w2.T + b2
    return jax.nn.sigmoid(o)


if __name__ == "__main__":
    key = jax.random.PRNGKey(0)
    k_x, k_w1, k_b1, k_w2, k_b2 = jax.random.split(key, 5)

    B = 8          # batch
    F = 32         # X_train.shape[1] (input feature dim)
    H = NUM_HIDDEN_NODES

    x = jax.random.normal(k_x, (B, F), dtype=jnp.float32)

    # Deterministic synthetic parameters (same shapes as nn.Linear weights).
    bound1 = 1.0 / jnp.sqrt(F)
    w1 = jax.random.uniform(k_w1, (H, F), jnp.float32, -bound1, bound1)
    b1 = jax.random.uniform(k_b1, (H,), jnp.float32, -bound1, bound1)
    bound2 = 1.0 / jnp.sqrt(H)
    w2 = jax.random.uniform(k_w2, (1, H), jnp.float32, -bound2, bound2)
    b2 = jax.random.uniform(k_b2, (1,), jnp.float32, -bound2, bound2)

    # Small single-tile case.
    out = classifier_forward(x, w1, b1, w2, b2)
    jax.block_until_ready(out)
    ref = reference_forward(x, w1, b1, w2, b2)
    assert out.shape == (B, 1)
    assert jnp.allclose(out, ref, atol=1e-5, rtol=1e-5)

    # Multi-step grid + batch padding path (exercises pipelining / parallel axis).
    B2 = 300
    x2 = jax.random.normal(jax.random.PRNGKey(1), (B2, F), dtype=jnp.float32)
    out2 = classifier_forward(x2, w1, b1, w2, b2, block_b=128)
    jax.block_until_ready(out2)
    ref2 = reference_forward(x2, w1, b1, w2, b2)
    assert out2.shape == (B2, 1)
    assert jnp.allclose(out2, ref2, atol=1e-5, rtol=1e-5)

    print("KERNEL_OK")
</pallas_src>

<mosaic_0001>
module attributes {stable_mosaic.version = 11 : i64} {
  func.func @_classifier_kernel(%arg0: i32, %arg1: memref<128x32xf32, #tpu.memory_space<vmem>>, %arg2: memref<10x32xf32, #tpu.memory_space<vmem>>, %arg3: memref<10x1xf32, #tpu.memory_space<vmem>>, %arg4: memref<1x10xf32, #tpu.memory_space<vmem>>, %arg5: memref<1x1xf32, #tpu.memory_space<vmem>>, %arg6: memref<1x128xf32, #tpu.memory_space<vmem>>) attributes {dimension_semantics = [#tpu.dimension_semantics<parallel>], iteration_bounds = array<i64: 1>, scalar_prefetch = 0 : i64, scratch_operands = 0 : i64, tpu.core_type = #tpu.core_type<tc>, window_params = [{transform_indices = @transform_0, window_bounds = array<i64: 128, 32>}, {pipeline_mode = #tpu.pipeline_mode<synchronous>, transform_indices = @transform_1, window_bounds = array<i64: 10, 32>}, {pipeline_mode = #tpu.pipeline_mode<synchronous>, transform_indices = @transform_2, window_bounds = array<i64: 10, 1>}, {pipeline_mode = #tpu.pipeline_mode<synchronous>, transform_indices = @transform_3, window_bounds = array<i64: 1, 10>}, {pipeline_mode = #tpu.pipeline_mode<synchronous>, transform_indices = @transform_4, window_bounds = array<i64: 1, 1>}, {transform_indices = @transform_5, window_bounds = array<i64: 1, 128>}]} {
    %c0 = arith.constant 0 : index
    %c0_0 = arith.constant 0 : index
    %0 = vector.load %arg1[%c0, %c0_0] : memref<128x32xf32, #tpu.memory_space<vmem>>, vector<128x32xf32>
    %c0_1 = arith.constant 0 : index
    %c0_2 = arith.constant 0 : index
    %1 = vector.load %arg2[%c0_1, %c0_2] : memref<10x32xf32, #tpu.memory_space<vmem>>, vector<10x32xf32>
    %2 = tpu.transpose %0, [1, 0] : vector<128x32xf32> -> vector<32x128xf32>
    %cst = arith.constant dense<0.000000e+00> : vector<10x128xf32>
    %3 = tpu.matmul %1, %2, %cst {dimension_numbers = #tpu.dot_dimension_numbers<[1], [0], [0], [1], [0, 0, 1, 1], [], []>} : vector<10x32xf32>, vector<32x128xf32>, vector<10x128xf32> -> vector<10x128xf32>
    %c0_3 = arith.constant 0 : index
    %c0_4 = arith.constant 0 : index
    %4 = vector.load %arg3[%c0_3, %c0_4] : memref<10x1xf32, #tpu.memory_space<vmem>>, vector<10x1xf32>
    %5 = vector.broadcast %4 : vector<10x1xf32> to vector<10x128xf32>
    %6 = arith.addf %3, %5 : vector<10x128xf32>
    %cst_5 = arith.constant 0.000000e+00 : f32
    %7 = vector.broadcast %cst_5 : f32 to vector<10x128xf32>
    %8 = arith.maximumf %6, %7 : vector<10x128xf32>
    %c0_6 = arith.constant 0 : index
    %c0_7 = arith.constant 0 : index
    %9 = vector.load %arg4[%c0_6, %c0_7] : memref<1x10xf32, #tpu.memory_space<vmem>>, vector<1x10xf32>
    %cst_8 = arith.constant dense<0.000000e+00> : vector<1x128xf32>
    %10 = tpu.matmul %9, %8, %cst_8 {dimension_numbers = #tpu.dot_dimension_numbers<[1], [0], [0], [1], [0, 0, 1, 1], [], []>} : vector<1x10xf32>, vector<10x128xf32>, vector<1x128xf32> -> vector<1x128xf32>
    %c0_9 = arith.constant 0 : index
    %c0_10 = arith.constant 0 : index
    %11 = vector.load %arg5[%c0_9, %c0_10] : memref<1x1xf32, #tpu.memory_space<vmem>>, vector<1x1xf32>
    %12 = vector.broadcast %11 : vector<1x1xf32> to vector<1x128xf32>
    %13 = arith.addf %10, %12 : vector<1x128xf32>
    %cst_11 = arith.constant 0.000000e+00 : f32
    %14 = vector.broadcast %cst_11 : f32 to vector<1x128xf32>
    %15 = arith.subf %14, %13 : vector<1x128xf32>
    %16 = math.exp %15 : vector<1x128xf32>
    %cst_12 = arith.constant 1.000000e+00 : f32
    %17 = vector.broadcast %cst_12 : f32 to vector<1x128xf32>
    %18 = arith.addf %17, %16 : vector<1x128xf32>
    %cst_13 = arith.constant 1.000000e+00 : f32
    %19 = vector.broadcast %cst_13 : f32 to vector<1x128xf32>
    %20 = arith.divf %19, %18 : vector<1x128xf32>
    %c0_14 = arith.constant 0 : index
    %c0_15 = arith.constant 0 : index
    %21 = vector.load %arg6[%c0_14, %c0_15] : memref<1x128xf32, #tpu.memory_space<vmem>>, vector<1x128xf32>
    tpu.vector_store %arg6[%c0_14, %c0_15], %20 {strides = array<i32>} : memref<1x128xf32, #tpu.memory_space<vmem>>, vector<1x128xf32>,
    return
  }
  func.func @transform_0(%arg0: i32) -> (i32, i32) {
    %c0_i32 = arith.constant 0 : i32
    %c0_i32_0 = arith.constant 0 : i32
    return %arg0, %c0_i32 : i32, i32
  }
  func.func @transform_1(%arg0: i32) -> (i32, i32) {
    %c0_i32 = arith.constant 0 : i32
    %c0_i32_0 = arith.constant 0 : i32
    %c0_i32_1 = arith.constant 0 : i32
    return %c0_i32, %c0_i32_0 : i32, i32
  }
  func.func @transform_2(%arg0: i32) -> (i32, i32) {
    %c0_i32 = arith.constant 0 : i32
    %c0_i32_0 = arith.constant 0 : i32
    %c0_i32_1 = arith.constant 0 : i32
    return %c0_i32, %c0_i32_0 : i32, i32
  }
  func.func @transform_3(%arg0: i32) -> (i32, i32) {
    %c0_i32 = arith.constant 0 : i32
    %c0_i32_0 = arith.constant 0 : i32
    %c0_i32_1 = arith.constant 0 : i32
    return %c0_i32, %c0_i32_0 : i32, i32
  }
  func.func @transform_4(%arg0: i32) -> (i32, i32) {
    %c0_i32 = arith.constant 0 : i32
    %c0_i32_0 = arith.constant 0 : i32
    %c0_i32_1 = arith.constant 0 : i32
    return %c0_i32, %c0_i32_0 : i32, i32
  }
  func.func @transform_5(%arg0: i32) -> (i32, i32) {
    %c0_i32 = arith.constant 0 : i32
    %c0_i32_0 = arith.constant 0 : i32
    return %c0_i32, %arg0 : i32, i32
  }
}

</mosaic_0001>

<bundles_post_ra>
// kernel: tpu_custom_call.1
= control target key start
LH: loop header
LB: loop body
LE: loop exit
PB: predicated region body
PF: predicated region fallthrough
CT: control target
= control target key end

     0   :  { %s620_s0 = inlined_call_operand.vmem [shape: f32[128,32], index: 0, kind: input, shape index: {}]   ;;  %s621_s1 = inlined_call_operand.vmem [shape: f32[10,32], index: 1, kind: input, shape index: {}]   ;;  %s622_s2 = inlined_call_operand.vmem [shape: f32[10,1], index: 2, kind: input, shape index: {}]   ;;  %s623_s3 = inlined_call_operand.vmem [shape: f32[1,10], index: 3, kind: input, shape index: {}]   ;;  %s624_s4 = inlined_call_operand.<no memory space> [shape: f32[1,1], index: 4, kind: input, shape index: {}]   ;;  %s625_s5 = inlined_call_operand.hbm [shape: f32[1,128], index: 5, kind: output, shape index: {}]  }
   0x1   :  { %v10_v0 = vstv %s624_s4 }
   0x2   :  { %11 = vst [vmem:[#allocation2] sm:$0x1] %v10_v0 }
   0x3   :  { %v23_v1 = vld [vmem:[%s620_s0] sm:$0xff]  ;;  %v24_v2 = vld [vmem:[%s620_s0 + $0x8] sm:$0xff]  ;;  %vm53_vm0 = vcmask 261120   ;;  %v25_v3 = vld [vmem:[%s620_s0 + $0x10] sm:$0xff]  ;;  %v466_v7 = vmov 0  }
   0x4   :  { %v378_v4 = vpack.c.bf16 %v24_v2, %v23_v1  ;;  %vm516_vm1 = vmpackc.low %vm53_vm0, %vm53_vm0  ;;  %v26_v6 = vld [vmem:[%s620_s0 + $0x18] sm:$0xff]  ;;  %436 = vset.pattern.permute.xlu0 %v466_v7  ;;  %437 = vset.pattern.permute.xlu1 %v466_v7  ;;  %v39_v9 = vld [vmem:[%s621_s1] sm:$0xff] }
   0x5   :  { %v384_v8 = vpack.c.bf16 %v26_v6, %v25_v3  ;;  %v27_v10 = vld [vmem:[%s620_s0 + $0x20] sm:$0xff]  ;;  %v28_v11 = vld [vmem:[%s620_s0 + $0x28] sm:$0xff]  ;;  %368 = vmatprep.mubr.msk.f32.mxu0 %vm53_vm0, %v39_v9 }
   0x6   :  { %380 = vmatprep.subr.msk.bf16.mxu0 %vm516_vm1, %v378_v4  ;;  %v41_v12 = vld [vmem:[%s622_s2] sm:$0xff] }
   0x7   :  { %383 = vmatpush3.bf16.xpose.msk.msra.mxu0 %vm516_vm1, %v378_v4  ;;  %45 = vperm.xlu0 %436, %v41_v12  }
   0x8   :  { %386 = vmatprep.subr.msk.bf16.mxu0 %vm516_vm1, %v384_v8 }
   0x9   :  { %12 = vsyncpa [#allocation4], 0  ;;  %v42_v13 = vld [vmem:[%s622_s2 + $0x8] sm:$0x3]  ;;  %v390_v14 = vpack.c.bf16 %v28_v11, %v27_v10  ;;  %v29_v15 = vld [vmem:[%s620_s0 + $0x30] sm:$0xff]  ;;  %v467_v31 = vmov 0.0|0.0   ;;  %v192_v44 = vlaneseq }
   0xa   :  { %v30_v16 = vld [vmem:[%s620_s0 + $0x38] sm:$0xff]  ;;  %v31_v18 = vld [vmem:[%s620_s0 + $0x40] sm:$0xff]  ;;  %v32_v19 = vld [vmem:[%s620_s0 + $0x48] sm:$0xff]  ;;  %426 = vmatprep.subr.bf16.mxu1 %v467_v31  ;;  %vm468_vm2 = vmmov 0   ;;  %v469_v32 = vmov 0.0   ;;  %vm200_vm3 = vcmask 1041408  }
   0xb   :  { %50 = vperm.xlu0 %436, %v42_v13   ;;  %v396_v17 = vpack.c.bf16 %v30_v16, %v29_v15  ;;  %v402_v20 = vpack.c.bf16 %v32_v19, %v31_v18  ;;  %v33_v21 = vld [vmem:[%s620_s0 + $0x50] sm:$0xff]  ;;  %v34_v22 = vld [vmem:[%s620_s0 + $0x58] sm:$0xff]  ;;  %v35_v24 = vld [vmem:[%s620_s0 + $0x60] sm:$0xff]  ;;  %375 = vmatprep.mubr.msk.f32.mxu1 %vm468_vm2, %v469_v32  ;;  %vm470_vm4 = vmmov 1   ;;  %vm196_vm6 = vcmask 80896   ;;  %s471_s7 = smov [#allocation3]  }
   0xc   :  { %v408_v23 = vpack.c.bf16 %v34_v22, %v33_v21  ;;  %v36_v25 = vld [vmem:[%s620_s0 + $0x68] sm:$0xff]  ;;  %v37_v27 = vld [vmem:[%s620_s0 + $0x70] sm:$0xff]  ;;  %v38_v28 = vld [vmem:[%s620_s0 + $0x78] sm:$0xff]  ;;  %v193_v45 = vshrl.u32 %v192_v44, 7  ;;  %s287_s8 = sshll.u32 %s471_s7, 4  ;;  %s288_s8 = int_to_ptr.vmem [resolvable:$true] %s287_s8 }
   0xd   :  { %v414_v26 = vpack.c.bf16 %v36_v25, %v35_v24  ;;  %v420_v29 = vpack.c.bf16 %v38_v28, %v37_v27  ;;  %v40_v30 = vld [vmem:[%s621_s1 + $0x8] sm:$0x3]  ;;  %v186_v33 = vld [vmem:[#allocation2] sm:$0x1]  ;;  %vm428_vm5 = vmpackc.low %vm200_vm3, %vm470_vm4  ;;  %s446_s9 = scalar_lea.vmem %s288_s8, 32  ;;  %p447_p1 = scmp.lt.s32.totalorder %s288_s8, %s288_s8 }
   0xe   :  { %189 = vperm.xlu1 %437, %v186_v33   ;;  %v185_v43 = vld [vmem:[%s623_s3] sm:$0x1]  ;;  %v194_v46 = vsub.s32 0, %v193_v45  ;;  %s442_s3 = scalar_lea.vmem %s288_s8, 16 }
   0xf   :  { %389 = vmatpush3.bf16.xpose.msk.msra.mxu0 %vm516_vm1, %v384_v8  ;;  %p443_p0 = scmp.ne.s32.totalorder %s288_s8, %s442_s3  ;;  %p448_p2 = scmp.lt.s32.totalorder %s446_s9, %s442_s3 }
  0x10   :  { %392 = vmatprep.subr.msk.bf16.mxu0 %vm516_vm1, %v390_v14 }
  0x11   :  { %p449_p3 = por %p448_p2, %p447_p1 }
  0x13   :  { %p450_p4 = pnand %p449_p3, %p443_p0 }
  0x17   :  { %395 = vmatpush3.bf16.xpose.msk.msra.mxu0 %vm516_vm1, %v390_v14 }
  0x18   :  { %398 = vmatprep.subr.msk.bf16.mxu0 %vm516_vm1, %v396_v17 }
  0x1f   :  { %401 = vmatpush3.bf16.xpose.msk.msra.mxu0 %vm516_vm1, %v396_v17 }
  0x20   :  { %404 = vmatprep.subr.msk.bf16.mxu0 %vm516_vm1, %v402_v20 }
  0x27   :  { %407 = vmatpush3.bf16.xpose.msk.msra.mxu0 %vm516_vm1, %v402_v20 }
  0x28   :  { %410 = vmatprep.subr.msk.bf16.mxu0 %vm516_vm1, %v408_v23 }
  0x2f   :  { %413 = vmatpush3.bf16.xpose.msk.msra.mxu0 %vm516_vm1, %v408_v23 }
  0x30   :  { %416 = vmatprep.subr.msk.bf16.mxu0 %vm516_vm1, %v414_v26 }
  0x37   :  { %419 = vmatpush3.bf16.xpose.msk.msra.mxu0 %vm516_vm1, %v414_v26 }
  0x38   :  { %422 = vmatprep.subr.msk.bf16.mxu0 %vm516_vm1, %v420_v29 }
  0x3f   :  { %425 = vmatpush3.bf16.xpose.msk.msra.mxu0 %vm516_vm1, %v420_v29 }
  0x46   :  { %369 = vmatmul.mubr.msk.f32.vlgmr.msra.gmra.mrb[0].mxu0 %vm53_vm0, %v40_v30 }
  0x86   :  { %v46_v34 = vpop.permute.xlu0 %45 }
  0x8a   :  { %v51_v35 = vpop.permute.xlu0 %50 }
  0x8d   :  { %v190_v47 = vpop.permute.xlu1 %189 }
  0x8e   :  { %v195_v48 = vrot.slane %v190_v47, %v194_v46 }
 0x119   :  { %v370_v36 = vpop.f32.mrb[0].mxu0 }
 0x11a   :  { %v180_v37 = vadd.f32 %v370_v36, %v51_v35  ;;  %v174_v38 = vpop.f32.mrb[1].mxu0 }
 0x11b   :  { %v175_v39 = vadd.f32 %v174_v38, %v46_v34 }
 0x11c   :  { %v184_v40 = vmax.f32 %v180_v37, 0.0 }
 0x11d   :  { %v183_v41 = vmax.f32 %v175_v39, 0.0 }
 0x11f   :  { %v427_v42 = vpack.c.bf16 %v184_v40, %v183_v41 }
 0x121   :  { %429 = vmatpush3.bf16.msk.msra.mxu1 %vm428_vm5, %v427_v42 }
 0x124   :  { %376 = vmatmul.mubr.msk.f32.vlgmr.msra.gmra.mrb[0].mxu1 %vm196_vm6, %v185_v43 }
 0x1f7   :  { %v270_v49 = vpop.f32.mrb[0].mxu1 }
 0x1f8   :  { %v271_v50 = vadd.f32 %v270_v49, %v195_v48  ;;  %v377_v51 = vpop.f32.mrb[1].mxu1 }
 0x1fa   :  { %v274_v52 = vsub.f32 0.0, %v271_v50 }
 0x1fc   :  { %v275_v53 = vmul.f32 1.442695, %v274_v52 }
 0x1fe   :  { %438 = vpow2.f32 %v275_v53 }
 0x208   :  { %v439_v54 = vpop.eup %438 }
 0x209   :  { %v277_v55 = vadd.f32 1.0, %v439_v54 }
 0x20b   :  { %440 = vrcp.f32 %v277_v55 }
 0x215   :  { %v441_v56 = vpop.eup %440 }
 0x216   :  { %280 = vst [vmem:[#allocation3] sm:$0x1] %v441_v56 }
 0x217   :  { %453 = shalt.err (!%p450_p4)
}
 0x218   :  { %s454_s12 = scalar_lea.hbm %s625_s5, 16 }
 0x219   :  { %p455_p5 = scmp.ne.s32.totalorder %s625_s5, %s454_s12  ;;  %p458_p6 = scmp.lt.u32.totalorder %s454_s12, %s625_s5 }
 0x21b   :  { %p460_p7 = pnand %p458_p6, %p455_p5 }
 0x21d   :  { %463 = shalt.err (!%p460_p7)
}
 0x21e   :  { %290 = dma.vmem_to_hbm [thread:$0]  %s288_s8, 16, %s625_s5, [#allocation4]  }
 0x21f   :  { %464 = dma.done.wait [#allocation4], 16  }
 0x220   :  { %465 = vsyncadd [#allocation4], 4294967280 }
 0x221   :  { %294 = vsyncpa [#allocation4], 1 }

</bundles_post_ra>
